<compile_context>
chip_gen: v6e
topology: v6e:2x2x1
jax: 0.10.0
libtpu: 0.0.40
codegen_flags: <defaults>
</compile_context>

<pallas_src>
import math
from functools import partial

import jax
import jax.numpy as jnp
from jax.experimental import pallas as pl
from jax.experimental.pallas import tpu as pltpu


def _round_up(x, m):
    return ((x + m - 1) // m) * m


def _fused_mlp_kernel(x_ref, *refs):
    """refs = (w0, b0, w1, b1, ..., o_ref); chains h = h @ W_i + b_i on the MXU."""
    o_ref = refs[-1]
    wb_refs = refs[:-1]
    n_layers = len(wb_refs) // 2

    h = x_ref[...]
    for i in range(n_layers):
        w = wb_refs[2 * i][...]
        b = wb_refs[2 * i + 1][...]
        # MXU matmul with f32 accumulation; bias add broadcasts (1, N)->(tm, N).
        # TODO(synk): for large layer widths on v6e/v7x, cast h/w to bfloat16
        # here (keep preferred_element_type=f32) to reach MXU peak.
        h = jnp.dot(h, w, preferred_element_type=jnp.float32) + b
    o_ref[...] = h.astype(o_ref.dtype)


def _fused_mlp_pallas(x_pad, padded_params, tm):
    """Run the fused padded MLP.  x_pad: (M_pad, d0), all dims lane/sublane-dense."""
    M_pad, d0 = x_pad.shape
    d_last = padded_params[-1][0].shape[1]
    grid = (M_pad // tm,)

    in_specs = [pl.BlockSpec((tm, d0), lambda i: (i, 0))]
    flat_args = []
    for w, b in padded_params:
        kp, np_ = w.shape
        # Weights/biases are grid-invariant -> stay resident in VMEM.
        in_specs.append(pl.BlockSpec((kp, np_), lambda i: (0, 0)))
        in_specs.append(pl.BlockSpec((1, np_), lambda i: (0, 0)))
        flat_args.extend([w, b])
    out_spec = pl.BlockSpec((tm, d_last), lambda i: (i, 0))

    flops = 0
    bytes_accessed = 4 * (M_pad * d0 + M_pad * d_last)
    for w, b in padded_params:
        flops += 2 * M_pad * w.shape[0] * w.shape[1]
        bytes_accessed += 4 * (w.size + b.size)

    return pl.pallas_call(
        _fused_mlp_kernel,
        out_shape=jax.ShapeDtypeStruct((M_pad, d_last), x_pad.dtype),
        grid=grid,
        in_specs=in_specs,
        out_specs=out_spec,
        compiler_params=pltpu.CompilerParams(
            # M axis is independent across tiles -> megacore-shardable on v7x.
            dimension_semantics=("parallel",),
        ),
        cost_estimate=pl.CostEstimate(
            flops=flops, transcendentals=0, bytes_accessed=bytes_accessed
        ),
    )(x_pad, *flat_args)


@partial(jax.jit, static_argnames=("out_features",))
def _linear_model_forward(x, padded_params, out_features):
    M, K = x.shape
    d0 = padded_params[0][0].shape[0]

    # Sublane-align the batch; tile over M with up to 128 rows per grid step.
    m_pad8 = _round_up(M, 8)
    tm = min(128, m_pad8)
    m_pad = _round_up(m_pad8, tm)

    x_pad = jnp.zeros((m_pad, d0), x.dtype).at[:M, :K].set(x)
    y_pad = _fused_mlp_pallas(x_pad, padded_params, tm)
    return y_pad[:M, :out_features]


class LinearModelPallas:
    """JAX/Pallas equivalent of mvit LinearModel(neurons=[...])."""

    def __init__(self, neurons=(768, 7), key=jax.random.PRNGKey(0)):
        self.neurons = tuple(neurons)
        self.params = []
        for i in range(len(neurons) - 1):
            fan_in, fan_out = neurons[i], neurons[i + 1]
            key, kw, kb = jax.random.split(key, 3)
            bound = 1.0 / math.sqrt(fan_in)
            # PyTorch nn.Linear default init: U(-1/sqrt(fan_in), 1/sqrt(fan_in))
            w = jax.random.uniform(kw, (fan_in, fan_out), jnp.float32, -bound, bound)
            b = jax.random.uniform(kb, (1, fan_out), jnp.float32, -bound, bound)
            self.params.append((w, b))

        # Zero-pad every feature dim to a multiple of 128 (lane-dense).  Padded
        # W columns/rows and bias entries are zero, so padded activations are
        # exactly zero and contribute nothing downstream.
        padded_dims = [_round_up(d, 128) for d in self.neurons]
        padded = []
        for i, (w, b) in enumerate(self.params):
            kp, np_ = padded_dims[i], padded_dims[i + 1]
            wp = jnp.zeros((kp, np_), jnp.float32).at[: w.shape[0], : w.shape[1]].set(w)
            bp = jnp.zeros((1, np_), jnp.float32).at[:, : b.shape[1]].set(b)
            padded.append((wp, bp))
        self.padded_params = tuple(padded)

    def __call__(self, x):
        return _linear_model_forward(x, self.padded_params, self.neurons[-1])


if __name__ == "__main__":
    key = jax.random.PRNGKey(0)

    # --- default module config: a single Linear(768, 7) ---
    k_x, k_p, key = jax.random.split(key, 3)
    neurons = [768, 7]
    batch = 4
    x = jax.random.normal(k_x, (batch, neurons[0]), jnp.float32)

    model = LinearModelPallas(neurons=neurons, key=k_p)
    y = jax.block_until_ready(model(x))

    ref = x
    for w, b in model.params:
        ref = ref @ w + b
    assert y.shape == (batch, neurons[-1])
    assert jnp.allclose(y, ref, atol=1e-4, rtol=1e-4)

    # --- multi-layer config to exercise the fused chain + padding ---
    k_x2, k_p2, key = jax.random.split(key, 3)
    neurons2 = [768, 200, 7]          # 200 is deliberately not 128-aligned
    x2 = jax.random.normal(k_x2, (5, neurons2[0]), jnp.float32)
    model2 = LinearModelPallas(neurons=neurons2, key=k_p2)
    y2 = jax.block_until_ready(model2(x2))

    ref2 = x2
    for w, b in model2.params:
        ref2 = ref2 @ w + b
    assert y2.shape == (5, neurons2[-1])
    assert jnp.allclose(y2, ref2, atol=1e-4, rtol=1e-4)

    print("KERNEL_OK")
</pallas_src>

<mosaic_0001>
module attributes {stable_mosaic.version = 11 : i64} {
  func.func @_fused_mlp_kernel(%arg0: i32, %arg1: memref<8x768xf32, #tpu.memory_space<vmem>>, %arg2: memref<768x128xf32, #tpu.memory_space<vmem>>, %arg3: memref<1x128xf32, #tpu.memory_space<vmem>>, %arg4: memref<8x128xf32, #tpu.memory_space<vmem>>) attributes {dimension_semantics = [#tpu.dimension_semantics<parallel>], iteration_bounds = array<i64: 1>, scalar_prefetch = 0 : i64, scratch_operands = 0 : i64, tpu.core_type = #tpu.core_type<tc>, window_params = [{transform_indices = @transform_0, window_bounds = array<i64: 8, 768>}, {pipeline_mode = #tpu.pipeline_mode<synchronous>, transform_indices = @transform_1, window_bounds = array<i64: 768, 128>}, {pipeline_mode = #tpu.pipeline_mode<synchronous>, transform_indices = @transform_2, window_bounds = array<i64: 1, 128>}, {transform_indices = @transform_3, window_bounds = array<i64: 8, 128>}]} {
    %c0 = arith.constant 0 : index
    %c0_0 = arith.constant 0 : index
    %0 = vector.load %arg1[%c0, %c0_0] : memref<8x768xf32, #tpu.memory_space<vmem>>, vector<8x768xf32>
    %c0_1 = arith.constant 0 : index
    %c0_2 = arith.constant 0 : index
    %1 = vector.load %arg2[%c0_1, %c0_2] : memref<768x128xf32, #tpu.memory_space<vmem>>, vector<768x128xf32>
    %c0_3 = arith.constant 0 : index
    %c0_4 = arith.constant 0 : index
    %2 = vector.load %arg3[%c0_3, %c0_4] : memref<1x128xf32, #tpu.memory_space<vmem>>, vector<1x128xf32>
    %cst = arith.constant dense<0.000000e+00> : vector<8x128xf32>
    %3 = tpu.matmul %0, %1, %cst {dimension_numbers = #tpu.dot_dimension_numbers<[1], [0], [0], [1], [0, 0, 1, 1], [], []>} : vector<8x768xf32>, vector<768x128xf32>, vector<8x128xf32> -> vector<8x128xf32>
    %4 = vector.broadcast %2 : vector<1x128xf32> to vector<8x128xf32>
    %5 = arith.addf %3, %4 : vector<8x128xf32>
    %c0_5 = arith.constant 0 : index
    %c0_6 = arith.constant 0 : index
    %6 = vector.load %arg4[%c0_5, %c0_6] : memref<8x128xf32, #tpu.memory_space<vmem>>, vector<8x128xf32>
    tpu.vector_store %arg4[%c0_5, %c0_6], %5 {strides = array<i32>} : memref<8x128xf32, #tpu.memory_space<vmem>>, vector<8x128xf32>,
    return
  }
  func.func @transform_0(%arg0: i32) -> (i32, i32) {
    %c0_i32 = arith.constant 0 : i32
    %c0_i32_0 = arith.constant 0 : i32
    return %arg0, %c0_i32 : i32, i32
  }
  func.func @transform_1(%arg0: i32) -> (i32, i32) {
    %c0_i32 = arith.constant 0 : i32
    %c0_i32_0 = arith.constant 0 : i32
    %c0_i32_1 = arith.constant 0 : i32
    return %c0_i32, %c0_i32_0 : i32, i32
  }
  func.func @transform_2(%arg0: i32) -> (i32, i32) {
    %c0_i32 = arith.constant 0 : i32
    %c0_i32_0 = arith.constant 0 : i32
    %c0_i32_1 = arith.constant 0 : i32
    return %c0_i32, %c0_i32_0 : i32, i32
  }
  func.func @transform_3(%arg0: i32) -> (i32, i32) {
    %c0_i32 = arith.constant 0 : i32
    %c0_i32_0 = arith.constant 0 : i32
    return %arg0, %c0_i32 : i32, i32
  }
}

</mosaic_0001>

<bundles_post_ra>
// kernel: _linear_model_forward.1
= control target key start
LH: loop header
LB: loop body
LE: loop exit
PB: predicated region body
PF: predicated region fallthrough
CT: control target
= control target key end

     0   :  { %8 = vsyncpa [#allocation3], 0  ;;  %s484_s12 = smov [#allocation2]   ;;  %s534_s0 = inlined_call_operand.vmem [shape: f32[8,768], index: 0, kind: input, shape index: {}]   ;;  %s535_s1 = inlined_call_operand.hbm [shape: f32[768,128], index: 1, kind: input, shape index: {}]   ;;  %s536_s2 = inlined_call_operand.vmem [shape: f32[1,128], index: 2, kind: input, shape index: {}]   ;;  %s537_s3 = inlined_call_operand.vmem [shape: f32[8,128], index: 3, kind: output, shape index: {}]  }
   0x1   :  { %s16_s13 = sshll.u32 %s484_s12, 4  ;;  %s17_s13 = int_to_ptr.vmem [resolvable:$true] %s16_s13 }
   0x2   :  { %s470_s14 = scalar_lea.vmem %s17_s13, 12288  ;;  %p475_p1 = scmp.lt.s32.totalorder %s17_s13, %s17_s13 }
   0x3   :  { %p471_p0 = scmp.ne.s32.totalorder %s17_s13, %s470_s14  ;;  %p476_p2 = scmp.lt.s32.totalorder %s470_s14, %s470_s14 }
   0x5   :  { %p477_p3 = por %p476_p2, %p475_p1 }
   0x7   :  { %p478_p4 = pnand %p477_p3, %p471_p0 }
   0x9   :  { %481 = shalt.err (!%p478_p4)
}
   0xa   :  { %s485_s15 = smov 128   ;;  %s486_s16 = smov 8  }
   0xb   :  { %22 = dma.hbm_to_vmem [thread:$0]  %s535_s1, 12288, %s17_s13, [#allocation3], %s485_s15, %s485_s15, %s486_s16  }
   0xc   :  { %482 = dma.done.wait [#allocation3], 12288  }
   0xd   :  { %483 = vsyncadd [#allocation3], 4294955008  ;;  %v65_v0 = vld [vmem:[#allocation2 + $0xf8] sm:$0xff]  ;;  %v64_v2 = vld [vmem:[#allocation2 + $0xf0] sm:$0xff] }
   0xe   :  { %v49_v1 = vld [vmem:[#allocation2 + $0x78] sm:$0xff]  ;;  %354 = vmatprep.subr.mxu0 %v65_v0  ;;  %v48_v4 = vld [vmem:[#allocation2 + $0x70] sm:$0xff]  ;;  %v63_v6 = vld [vmem:[#allocation2 + $0xe8] sm:$0xff] }
   0xf   :  { %v97_v3 = vld [vmem:[#allocation2 + $0x1f8] sm:$0xff]  ;;  %355 = vmatpush3.msra.mxu0 %v49_v1  ;;  %v96_v7 = vld [vmem:[#allocation2 + $0x1f0] sm:$0xff]  ;;  %v47_v8 = vld [vmem:[#allocation2 + $0x68] sm:$0xff] }
  0x10   :  { %v81_v5 = vld [vmem:[#allocation2 + $0x178] sm:$0xff]  ;;  %389 = vmatprep.subr.mxu1 %v97_v3  ;;  %356 = vmatprep.subr.mxu0 %v64_v2  ;;  %v80_v9 = vld [vmem:[#allocation2 + $0x170] sm:$0xff]  ;;  %v95_v10 = vld [vmem:[#allocation2 + $0x1e8] sm:$0xff] }
  0x11   :  { %390 = vmatpush3.msra.mxu1 %v81_v5  ;;  %357 = vmatpush3.msra.mxu0 %v48_v4  ;;  %v62_v11 = vld [vmem:[#allocation2 + $0xe0] sm:$0xff]  ;;  %v79_v12 = vld [vmem:[#allocation2 + $0x168] sm:$0xff]  ;;  %v61_v15 = vld [vmem:[#allocation2 + $0xd8] sm:$0xff] }
  0x12   :  { %391 = vmatprep.subr.mxu1 %v96_v7  ;;  %358 = vmatprep.subr.mxu0 %v63_v6  ;;  %v46_v13 = vld [vmem:[#allocation2 + $0x60] sm:$0xff]  ;;  %v45_v17 = vld [vmem:[#allocation2 + $0x58] sm:$0xff]  ;;  %v60_v19 = vld [vmem:[#allocation2 + $0xd0] sm:$0xff] }
  0x13   :  { %392 = vmatpush3.msra.mxu1 %v80_v9  ;;  %v94_v14 = vld [vmem:[#allocation2 + $0x1e0] sm:$0xff]  ;;  %359 = vmatpush3.msra.mxu0 %v47_v8  ;;  %v93_v18 = vld [vmem:[#allocation2 + $0x1d8] sm:$0xff]  ;;  %v44_v21 = vld [vmem:[#allocation2 + $0x50] sm:$0xff] }
  0x14   :  { %393 = vmatprep.subr.mxu1 %v95_v10  ;;  %v78_v16 = vld [vmem:[#allocation2 + $0x160] sm:$0xff]  ;;  %360 = vmatprep.subr.mxu0 %v62_v11  ;;  %v77_v20 = vld [vmem:[#allocation2 + $0x158] sm:$0xff]  ;;  %v92_v22 = vld [vmem:[#allocation2 + $0x1d0] sm:$0xff] }
  0x15   :  { %394 = vmatpush3.msra.mxu1 %v79_v12  ;;  %361 = vmatpush3.msra.mxu0 %v46_v13  ;;  %v59_v23 = vld [vmem:[#allocation2 + $0xc8] sm:$0xff]  ;;  %v76_v24 = vld [vmem:[#allocation2 + $0x150] sm:$0xff]  ;;  %v58_v27 = vld [vmem:[#allocation2 + $0xc0] sm:$0xff] }
  0x16   :  { %395 = vmatprep.subr.mxu1 %v94_v14  ;;  %362 = vmatprep.subr.mxu0 %v61_v15  ;;  %v43_v25 = vld [vmem:[#allocation2 + $0x48] sm:$0xff]  ;;  %v42_v29 = vld [vmem:[#allocation2 + $0x40] sm:$0xff]  ;;  %v57_v31 = vld [vmem:[#allocation2 + $0xb8] sm:$0xff] }
  0x17   :  { %396 = vmatpush3.msra.mxu1 %v78_v16  ;;  %363 = vmatpush3.msra.mxu0 %v45_v17  ;;  %v91_v26 = vld [vmem:[#allocation2 + $0x1c8] sm:$0xff]  ;;  %v90_v30 = vld [vmem:[#allocation2 + $0x1c0] sm:$0xff]  ;;  %v41_v33 = vld [vmem:[#allocation2 + $0x38] sm:$0xff] }
  0x18   :  { %397 = vmatprep.subr.mxu1 %v93_v18  ;;  %364 = vmatprep.subr.mxu0 %v60_v19  ;;  %v75_v28 = vld [vmem:[#allocation2 + $0x148] sm:$0xff]  ;;  %v74_v32 = vld [vmem:[#allocation2 + $0x140] sm:$0xff]  ;;  %v89_v34 = vld [vmem:[#allocation2 + $0x1b8] sm:$0xff] }
  0x19   :  { %398 = vmatpush3.msra.mxu1 %v77_v20  ;;  %365 = vmatpush3.msra.mxu0 %v44_v21  ;;  %v56_v35 = vld [vmem:[#allocation2 + $0xb0] sm:$0xff]  ;;  %v73_v36 = vld [vmem:[#allocation2 + $0x138] sm:$0xff]  ;;  %v55_v39 = vld [vmem:[#allocation2 + $0xa8] sm:$0xff] }
  0x1a   :  { %399 = vmatprep.subr.mxu1 %v92_v22  ;;  %366 = vmatprep.subr.mxu0 %v59_v23  ;;  %v40_v37 = vld [vmem:[#allocation2 + $0x30] sm:$0xff]  ;;  %v39_v41 = vld [vmem:[#allocation2 + $0x28] sm:$0xff]  ;;  %v54_v43 = vld [vmem:[#allocation2 + $0xa0] sm:$0xff] }
  0x1b   :  { %400 = vmatpush3.msra.mxu1 %v76_v24  ;;  %367 = vmatpush3.msra.mxu0 %v43_v25  ;;  %v88_v38 = vld [vmem:[#allocation2 + $0x1b0] sm:$0xff]  ;;  %v87_v42 = vld [vmem:[#allocation2 + $0x1a8] sm:$0xff]  ;;  %v38_v45 = vld [vmem:[#allocation2 + $0x20] sm:$0xff] }
  0x1c   :  { %401 = vmatprep.subr.mxu1 %v91_v26  ;;  %368 = vmatprep.subr.mxu0 %v58_v27  ;;  %v72_v40 = vld [vmem:[#allocation2 + $0x130] sm:$0xff]  ;;  %v71_v44 = vld [vmem:[#allocation2 + $0x128] sm:$0xff]  ;;  %v86_v46 = vld [vmem:[#allocation2 + $0x1a0] sm:$0xff] }
  0x1d   :  { %402 = vmatpush3.msra.mxu1 %v75_v28  ;;  %369 = vmatpush3.msra.mxu0 %v42_v29  ;;  %v53_v47 = vld [vmem:[#allocation2 + $0x98] sm:$0xff]  ;;  %v70_v48 = vld [vmem:[#allocation2 + $0x120] sm:$0xff]  ;;  %v52_v51 = vld [vmem:[#allocation2 + $0x90] sm:$0xff] }
  0x1e   :  { %403 = vmatprep.subr.mxu1 %v90_v30  ;;  %370 = vmatprep.subr.mxu0 %v57_v31  ;;  %v37_v49 = vld [vmem:[#allocation2 + $0x18] sm:$0xff]  ;;  %v36_v53 = vld [vmem:[#allocation2 + $0x10] sm:$0xff]  ;;  %v51_v55 = vld [vmem:[#allocation2 + $0x88] sm:$0xff] }
  0x1f   :  { %404 = vmatpush3.msra.mxu1 %v74_v32  ;;  %371 = vmatpush3.msra.mxu0 %v41_v33  ;;  %v85_v50 = vld [vmem:[#allocation2 + $0x198] sm:$0xff]  ;;  %v84_v54 = vld [vmem:[#allocation2 + $0x190] sm:$0xff]  ;;  %v35_v57 = vld [vmem:[#allocation2 + $0x8] sm:$0xff] }
  0x20   :  { %405 = vmatprep.subr.mxu1 %v89_v34  ;;  %372 = vmatprep.subr.mxu0 %v56_v35  ;;  %v69_v52 = vld [vmem:[#allocation2 + $0x118] sm:$0xff]  ;;  %v68_v56 = vld [vmem:[#allocation2 + $0x110] sm:$0xff]  ;;  %v83_v58 = vld [vmem:[#allocation2 + $0x188] sm:$0xff] }
  0x21   :  { %406 = vmatpush3.msra.mxu1 %v73_v36  ;;  %373 = vmatpush3.msra.mxu0 %v40_v37  ;;  %v50_v59 = vld [vmem:[#allocation2 + $0x80] sm:$0xff]  ;;  %v29_v60 = vld [vmem:[%s534_s0 + $0x8] sm:$0xff]  ;;  %v129_v1 = vld [vmem:[#allocation2 + $0x2f8] sm:$0xff] }
  0x22   :  { %407 = vmatprep.subr.mxu1 %v88_v38  ;;  %374 = vmatprep.subr.mxu0 %v55_v39  ;;  %v34_v61 = vld [vmem:[#allocation2] sm:$0xff]  ;;  %v67_v62 = vld [vmem:[#allocation2 + $0x108] sm:$0xff]  ;;  %v31_v3 = vld [vmem:[%s534_s0 + $0x18] sm:$0xff] }
  0x23   :  { %408 = vmatpush3.msra.mxu1 %v72_v40  ;;  %375 = vmatpush3.msra.mxu0 %v39_v41  ;;  %v28_v63 = vld [vmem:[%s534_s0] sm:$0xff]  ;;  %v113_v4 = vld [vmem:[#allocation2 + $0x278] sm:$0xff]  ;;  %v30_v5 = vld [vmem:[%s534_s0 + $0x10] sm:$0xff] }
  0x24   :  { %409 = vmatprep.subr.mxu1 %v87_v42  ;;  %376 = vmatprep.subr.mxu0 %v54_v43  ;;  %v82_v0 = vld [vmem:[#allocation2 + $0x180] sm:$0xff]  ;;  %v128_v6 = vld [vmem:[#allocation2 + $0x2f0] sm:$0xff]  ;;  %v33_v8 = vld [vmem:[%s534_s0 + $0x28] sm:$0xff] }
  0x25   :  { %410 = vmatpush3.msra.mxu1 %v71_v44  ;;  %377 = vmatpush3.msra.mxu0 %v38_v45  ;;  %v66_v2 = vld [vmem:[#allocation2 + $0x100] sm:$0xff]  ;;  %v112_v7 = vld [vmem:[#allocation2 + $0x270] sm:$0xff]  ;;  %v127_v9 = vld [vmem:[#allocation2 + $0x2e8] sm:$0xff] }
  0x26   :  { %411 = vmatprep.subr.mxu1 %v86_v46  ;;  %378 = vmatprep.subr.mxu0 %v53_v47  ;;  %v111_v10 = vld [vmem:[#allocation2 + $0x268] sm:$0xff]  ;;  %v126_v11 = vld [vmem:[#allocation2 + $0x2e0] sm:$0xff]  ;;  %v125_v13 = vld [vmem:[#allocation2 + $0x2d8] sm:$0xff] }
  0x27   :  { %412 = vmatpush3.msra.mxu1 %v70_v48  ;;  %379 = vmatpush3.msra.mxu0 %v37_v49  ;;  %v110_v12 = vld [vmem:[#allocation2 + $0x260] sm:$0xff]  ;;  %v109_v14 = vld [vmem:[#allocation2 + $0x258] sm:$0xff]  ;;  %v124_v15 = vld [vmem:[#allocation2 + $0x2d0] sm:$0xff] }
  0x28   :  { %413 = vmatprep.subr.mxu1 %v85_v50  ;;  %380 = vmatprep.subr.mxu0 %v52_v51  ;;  %v108_v16 = vld [vmem:[#allocation2 + $0x250] sm:$0xff]  ;;  %v123_v17 = vld [vmem:[#allocation2 + $0x2c8] sm:$0xff]  ;;  %v122_v19 = vld [vmem:[#allocation2 + $0x2c0] sm:$0xff] }
  0x29   :  { %414 = vmatpush3.msra.mxu1 %v69_v52  ;;  %381 = vmatpush3.msra.mxu0 %v36_v53  ;;  %v107_v18 = vld [vmem:[#allocation2 + $0x248] sm:$0xff]  ;;  %v106_v20 = vld [vmem:[#allocation2 + $0x240] sm:$0xff]  ;;  %v121_v21 = vld [vmem:[#allocation2 + $0x2b8] sm:$0xff] }
  0x2a   :  { %415 = vmatprep.subr.mxu1 %v84_v54  ;;  %382 = vmatprep.subr.mxu0 %v51_v55  ;;  %v105_v22 = vld [vmem:[#allocation2 + $0x238] sm:$0xff]  ;;  %v120_v23 = vld [vmem:[#allocation2 + $0x2b0] sm:$0xff]  ;;  %v119_v25 = vld [vmem:[#allocation2 + $0x2a8] sm:$0xff] }
  0x2b   :  { %416 = vmatpush3.msra.mxu1 %v68_v56  ;;  %383 = vmatpush3.msra.mxu0 %v35_v57  ;;  %v104_v24 = vld [vmem:[#allocation2 + $0x230] sm:$0xff]  ;;  %v103_v26 = vld [vmem:[#allocation2 + $0x228] sm:$0xff]  ;;  %v118_v27 = vld [vmem:[#allocation2 + $0x2a0] sm:$0xff] }
  0x2c   :  { %417 = vmatprep.subr.mxu1 %v83_v58  ;;  %384 = vmatprep.subr.mxu0 %v50_v59  ;;  %v102_v28 = vld [vmem:[#allocation2 + $0x220] sm:$0xff]  ;;  %v117_v29 = vld [vmem:[#allocation2 + $0x298] sm:$0xff]  ;;  %v116_v31 = vld [vmem:[#allocation2 + $0x290] sm:$0xff] }
  0x2d   :  { %201 = vmatprep.mubr.f32.mxu0 %v29_v60  ;;  %385 = vmatpush3.msra.mxu0 %v34_v61  ;;  %v101_v30 = vld [vmem:[#allocation2 + $0x218] sm:$0xff]  ;;  %v100_v32 = vld [vmem:[#allocation2 + $0x210] sm:$0xff]  ;;  %v115_v33 = vld [vmem:[#allocation2 + $0x288] sm:$0xff] }
  0x2e   :  { %418 = vmatpush3.msra.mxu1 %v67_v62  ;;  %202 = vmatmul.mubr.f32.vlgmr.msra.gmra.mxu0 %v28_v63  ;;  %v99_v34 = vld [vmem:[#allocation2 + $0x208] sm:$0xff]  ;;  %v114_v35 = vld [vmem:[#allocation2 + $0x280] sm:$0xff] }
  0x2f   :  { %419 = vmatprep.subr.mxu1 %v82_v0  ;;  %424 = vmatprep.subr.mxu0 %v129_v1  ;;  %v98_v36 = vld [vmem:[#allocation2 + $0x200] sm:$0xff] }
  0x30   :  { %420 = vmatpush3.msra.mxu1 %v66_v2  ;;  %271 = vmatprep.mubr.f32.mxu1 %v31_v3  ;;  %v32_v37 = vld [vmem:[%s534_s0 + $0x20] sm:$0xff] }
  0x31   :  { %425 = vmatpush3.msra.mxu0 %v113_v4  ;;  %272 = vmatmul.mubr.f32.vlgmr.msra.gmra.mxu1 %v30_v5  ;;  %v353_v42 = vld [vmem:[%s536_s2] ss:$0 sm:$0xff] }
  0x32   :  { %426 = vmatprep.subr.mxu0 %v128_v6  ;;  %341 = vmatprep.mubr.f32.mxu0 %v33_v8 }
  0x33   :  { %427 = vmatpush3.msra.mxu0 %v112_v7 }
  0x34   :  { %428 = vmatprep.subr.mxu0 %v127_v9 }
  0x35   :  { %429 = vmatpush3.msra.mxu0 %v111_v10 }
  0x36   :  { %430 = vmatprep.subr.mxu0 %v126_v11 }
  0x37   :  { %431 = vmatpush3.msra.mxu0 %v110_v12 }
  0x38   :  { %432 = vmatprep.subr.mxu0 %v125_v13 }
  0x39   :  { %433 = vmatpush3.msra.mxu0 %v109_v14 }
  0x3a   :  { %434 = vmatprep.subr.mxu0 %v124_v15 }
  0x3b   :  { %435 = vmatpush3.msra.mxu0 %v108_v16 }
  0x3c   :  { %436 = vmatprep.subr.mxu0 %v123_v17 }
  0x3d   :  { %437 = vmatpush3.msra.mxu0 %v107_v18 }
  0x3e   :  { %438 = vmatprep.subr.mxu0 %v122_v19 }
  0x3f   :  { %439 = vmatpush3.msra.mxu0 %v106_v20 }
  0x40   :  { %440 = vmatprep.subr.mxu0 %v121_v21 }
  0x41   :  { %441 = vmatpush3.msra.mxu0 %v105_v22 }
  0x42   :  { %442 = vmatprep.subr.mxu0 %v120_v23 }
  0x43   :  { %443 = vmatpush3.msra.mxu0 %v104_v24 }
  0x44   :  { %444 = vmatprep.subr.mxu0 %v119_v25 }
  0x45   :  { %445 = vmatpush3.msra.mxu0 %v103_v26 }
  0x46   :  { %446 = vmatprep.subr.mxu0 %v118_v27 }
  0x47   :  { %447 = vmatpush3.msra.mxu0 %v102_v28 }
  0x48   :  { %448 = vmatprep.subr.mxu0 %v117_v29 }
  0x49   :  { %449 = vmatpush3.msra.mxu0 %v101_v30 }
  0x4a   :  { %450 = vmatprep.subr.mxu0 %v116_v31 }
  0x4b   :  { %451 = vmatpush3.msra.mxu0 %v100_v32 }
  0x4c   :  { %452 = vmatprep.subr.mxu0 %v115_v33 }
  0x4d   :  { %453 = vmatpush3.msra.mxu0 %v99_v34 }
  0x4e   :  { %454 = vmatprep.subr.mxu0 %v114_v35 }
  0x4f   :  { %455 = vmatpush3.msra.mxu0 %v98_v36 }
  0x50   :  { %342 = vmatmul.mubr.f32.vlgmr.msra.gmra.mxu0 %v32_v37 }
  0xee   :  { %v386_v38 = vpop.f32.mrf.mxu0 }
  0xf0   :  { %v387_v39 = vpop.f32.mrf.mxu0 }
  0xf1   :  { %v421_v40 = vpop.f32.mrf.mxu1  ;;  %v388_v41 = vadd.f32 %v387_v39, %v386_v38 }
  0xf3   :  { %v422_v43 = vpop.f32.mrf.mxu1  ;;  %v204_v44 = vadd.f32 %v388_v41, %v353_v42 }
  0xf4   :  { %v423_v45 = vadd.f32 %v422_v43, %v421_v40 }
  0xf6   :  { %v274_v48 = vadd.f32 %v423_v45, %v204_v44 }
 0x110   :  { %v456_v46 = vpop.f32.mrf.mxu0 }
 0x112   :  { %v457_v47 = vpop.f32.mrf.mxu0 }
 0x113   :  { %v458_v49 = vadd.f32 %v457_v47, %v456_v46 }
 0x115   :  { %v344_v50 = vadd.f32 %v458_v49, %v274_v48 }
 0x117   :  { %347 = vst [vmem:[%s537_s3] sm:$0xff] %v344_v50 }
 0x118   :  { %352 = vsyncpa [#allocation3], 1 }

</bundles_post_ra>
